<compile_context>
chip_gen: v7x
topology: tpu7x:2x2x1
jax: 0.10.0
libtpu: 0.0.40
codegen_flags: <defaults>
</compile_context>

<pallas_src>
import jax
import jax.numpy as jnp
from jax.experimental import pallas as pl
from jax.experimental.pallas import tpu as pltpu


# pltpu.CompilerParams on current JAX; TPUCompilerParams on older releases.
_CompilerParams = getattr(pltpu, "CompilerParams", None) or getattr(
    pltpu, "TPUCompilerParams")


def _round_up(x, m):
    return ((x + m - 1) // m) * m


def _round_down(x, m):
    return (x // m) * m


def fuse_embeddings_kernel(user_ref, poi_ref, wu_ref, wp_ref, b_ref, o_ref):
    """One row tile: concat(u, p) @ W^T + b, then LeakyReLU(0.2).

    The concat never materializes: W^T is pre-split along the input dim (and
    block-diagonal replicated for row packing), so the fused Linear is two
    back-to-back MXU dots accumulated in f32.
    """
    y = jnp.dot(user_ref[...], wu_ref[...], preferred_element_type=jnp.float32)
    y = y + jnp.dot(poi_ref[...], wp_ref[...], preferred_element_type=jnp.float32)
    y = y + b_ref[...].astype(jnp.float32)            # bias broadcast over rows
    # LeakyReLU(0.2) == max(y, 0.2*y) since slope < 1 (saves a compare+select).
    o_ref[...] = jnp.maximum(y, 0.2 * y).astype(o_ref.dtype)


def _pick_row_pack(u_dim, p_dim, embed_dim):
    """Smallest R so every streamed last dim (R*U, R*P, R*E) is a multiple of
    128 lanes (fully lane-dense loads/stores).  Falls back to 1 (correct but
    lane-padded) for awkward feature dims."""
    for r in (1, 2, 4, 8, 16, 32, 64, 128):
        if (r * u_dim) % 128 == 0 and (r * p_dim) % 128 == 0 \
                and (r * embed_dim) % 128 == 0:
            return r
    return 1


def _pick_tile_m(m, u_cols, p_cols, out_cols, itemsize, *, row_align=8,
                 vmem_budget_bytes=26 << 20, max_tile=4096):
    """Packed-row tile: biggest tile whose *padded* double-buffered streams
    plus resident weights fit a v7x-safe VMEM budget, capped so the grid
    keeps >= 2 steps (v7x megacore) and at max_tile (each step then moves
    ~MiB of HBM, far above the ~0.35 us per-step overhead)."""
    lane = lambda d: _round_up(d, 128)        # lane (last-dim) padding in VMEM
    sub = lambda d: _round_up(d, 8)           # sublane padding
    # Weights + bias: the pipeline allocates 2 buffers even for constant blocks.
    weight_bytes = 2 * (sub(u_cols) + sub(p_cols) + sub(1)) * lane(out_cols) * itemsize
    # Double-buffered input streams + double-buffered output stream, per row.
    per_row = 2 * (lane(u_cols) + lane(p_cols) + lane(out_cols)) * itemsize
    avail = max(vmem_budget_bytes - weight_bytes, row_align * per_row)
    tile = min(max_tile, _round_down(avail // per_row, row_align))
    if m >= 2 * row_align:
        # Keep at least two grid steps so v7x can shard rows across its 2 TCs.
        tile = min(tile, _round_up(-(-m // 2), row_align))
    tile = max(tile, row_align)
    if tile >= m:
        return int(m)                          # single full block
    return int(tile)


def fuse_embeddings(user_embed, poi_embed, weight, bias, *, tile_m=None,
                    row_pack=None):
    """user_embed: (N, U), poi_embed: (N, P),
    weight: (embed_dim, embed_dim) in PyTorch Linear (out, in) layout,
    bias: (embed_dim,).  Returns (N, embed_dim), embed_dim = U + P."""
    n, u_dim = user_embed.shape
    n2, p_dim = poi_embed.shape
    assert n == n2, "user/poi row counts must match"
    embed_dim = u_dim + p_dim
    assert weight.shape == (embed_dim, embed_dim)
    assert bias.shape == (embed_dim,)

    out_dtype = user_embed.dtype
    itemsize = jnp.dtype(out_dtype).itemsize
    # 8 rows per sublane-group for 32-bit, 16 for 16-bit, 32 for 8-bit dtypes.
    row_align = max(8, 32 // itemsize)

    r = int(row_pack) if row_pack is not None else _pick_row_pack(u_dim, p_dim, embed_dim)

    # Pad N up to a multiple of R with zero rows (sliced off at the end).
    n_pad = _round_up(n, r)
    if n_pad != n:
        pad = n_pad - n
        user_embed = jnp.pad(user_embed, ((0, pad), (0, 0)))
        poi_embed = jnp.pad(poi_embed, ((0, pad), (0, 0)))
    m = n_pad // r

    # Free row-major fold of R rows into lanes: (n_pad, U) -> (m, R*U).
    u_cols, p_cols, out_cols = r * u_dim, r * p_dim, r * embed_dim
    u_packed = user_embed.reshape(m, u_cols)
    p_packed = poi_embed.reshape(m, p_cols)

    # Parameters: (in, out) layout, split along the input dim (no concat
    # anywhere), then block-diagonal replicated R times so each packed row
    # multiplies its own copy of the weights.
    w_t = weight.T.astype(out_dtype)
    wu_t = w_t[:u_dim, :]                      # (U, E)
    wp_t = w_t[u_dim:, :]                      # (P, E)
    if r > 1:
        eye = jnp.eye(r, dtype=out_dtype)
        wu_k = jnp.kron(eye, wu_t)             # (R*U, R*E) block-diagonal
        wp_k = jnp.kron(eye, wp_t)             # (R*P, R*E) block-diagonal
        b_k = jnp.tile(bias.astype(out_dtype), r).reshape(1, out_cols)
    else:
        wu_k, wp_k = wu_t, wp_t
        b_k = bias.astype(out_dtype).reshape(1, out_cols)

    if tile_m is None:
        tile_m = _pick_tile_m(m, u_cols, p_cols, out_cols, itemsize,
                              row_align=row_align)
    else:
        tile_m = int(tile_m)
        if tile_m >= m:
            tile_m = m
        else:
            tile_m = max(_round_down(tile_m, row_align), row_align)
            if tile_m >= m:
                tile_m = m

    grid = (pl.cdiv(m, tile_m),)

    out_packed = pl.pallas_call(
        fuse_embeddings_kernel,
        out_shape=jax.ShapeDtypeStruct((m, out_cols), out_dtype),
        grid=grid,
        in_specs=[
            # Activations: streamed over packed rows (pipelined HBM->VMEM).
            pl.BlockSpec((tile_m, u_cols), lambda i: (i, 0)),
            pl.BlockSpec((tile_m, p_cols), lambda i: (i, 0)),
            # Weights / bias: constant block index -> fetched once, resident.
            # TODO(synk): pipeline_mode=pl.Buffered(1) here would drop the
            # pointless second buffer; skipped (negligible at these dims).
            pl.BlockSpec((u_cols, out_cols), lambda i: (0, 0)),
            pl.BlockSpec((p_cols, out_cols), lambda i: (0, 0)),
            pl.BlockSpec((1, out_cols), lambda i: (0, 0)),
        ],
        out_specs=pl.BlockSpec((tile_m, out_cols), lambda i: (i, 0)),
        compiler_params=_CompilerParams(
            # Rows are independent: lets v7x shard the grid across its two
            # TensorCores; harmless on single-TC v5e/v6e.
            dimension_semantics=("parallel",),
            # Explicit scoped-VMEM limit (v5e default is only 16 MiB); tile
            # selection keeps the real working set <= ~26 MiB (v7x-safe).
            vmem_limit_bytes=32 << 20,
        ),
    )(u_packed, p_packed, wu_k, wp_k, b_k)

    # Free row-major unfold back to (n_pad, embed_dim); drop padded rows.
    out = out_packed.reshape(n_pad, embed_dim)
    if n_pad != n:
        out = out[:n]
    return out


def fuse_embeddings_ref(user_embed, poi_embed, weight, bias):
    x = jnp.concatenate((user_embed, poi_embed), axis=-1)
    y = x @ weight.T + bias
    return jnp.where(y >= 0, y, 0.2 * y)


if __name__ == "__main__":
    key = jax.random.PRNGKey(0)
    k_u, k_p, k_w, k_b = jax.random.split(key, 4)

    # Module-consistent toy shapes: batch=5, seq=8 -> 40 fused rows.
    N = 40
    USER_DIM = 16
    POI_DIM = 16
    EMBED_DIM = USER_DIM + POI_DIM

    user_embed = jax.random.normal(k_u, (N, USER_DIM), dtype=jnp.float32)
    poi_embed = jax.random.normal(k_p, (N, POI_DIM), dtype=jnp.float32)

    # Deterministic parameters (mimics PyTorch Linear default uniform bound).
    bound = 1.0 / (EMBED_DIM ** 0.5)
    weight = jax.random.uniform(
        k_w, (EMBED_DIM, EMBED_DIM), minval=-bound, maxval=bound, dtype=jnp.float32)
    bias = jax.random.uniform(
        k_b, (EMBED_DIM,), minval=-bound, maxval=bound, dtype=jnp.float32)

    fused = jax.jit(fuse_embeddings, static_argnames=("tile_m", "row_pack"))

    # 1) Default config: lane-dense packing (R=8), single full block at toy N.
    ref = fuse_embeddings_ref(user_embed, poi_embed, weight, bias)
    out = jax.block_until_ready(fused(user_embed, poi_embed, weight, bias))
    assert out.shape == (N, EMBED_DIM)
    assert jnp.allclose(out, ref, atol=1e-5, rtol=1e-5), "mismatch (default)"

    # 2) Larger N, default tile: >= 2 grid steps (exercises the megacore path).
    N2 = 203  # not a multiple of the row packing -> exercises the pad path too
    u2 = jax.random.normal(k_u, (N2, USER_DIM), dtype=jnp.float32)
    p2 = jax.random.normal(k_p, (N2, POI_DIM), dtype=jnp.float32)
    ref2 = fuse_embeddings_ref(u2, p2, weight, bias)
    out2 = jax.block_until_ready(fused(u2, p2, weight, bias))
    assert jnp.allclose(out2, ref2, atol=1e-5, rtol=1e-5), "mismatch (2-step)"

    # 3) Forced small packed-row tile: multi-step pipelined grid with a
    #    masked partial tail block (the production non-divisible-N path).
    out3 = jax.block_until_ready(fused(u2, p2, weight, bias, tile_m=8))
    assert jnp.allclose(out3, ref2, atol=1e-5, rtol=1e-5), "mismatch (tiled)"

    print("KERNEL_OK")
</pallas_src>

<mosaic_0001>
module attributes {stable_mosaic.version = 11 : i64} {
  func.func @fuse_embeddings_kernel(%arg0: i32, %arg1: memref<5x128xf32, #tpu.memory_space<vmem>>, %arg2: memref<5x128xf32, #tpu.memory_space<vmem>>, %arg3: memref<128x256xf32, #tpu.memory_space<vmem>>, %arg4: memref<128x256xf32, #tpu.memory_space<vmem>>, %arg5: memref<1x256xf32, #tpu.memory_space<vmem>>, %arg6: memref<5x256xf32, #tpu.memory_space<vmem>>) attributes {dimension_semantics = [#tpu.dimension_semantics<parallel>], iteration_bounds = array<i64: 1>, scalar_prefetch = 0 : i64, scratch_operands = 0 : i64, tpu.core_type = #tpu.core_type<tc>, window_params = [{transform_indices = @transform_0, window_bounds = array<i64: 5, 128>}, {transform_indices = @transform_1, window_bounds = array<i64: 5, 128>}, {pipeline_mode = #tpu.pipeline_mode<synchronous>, transform_indices = @transform_2, window_bounds = array<i64: 128, 256>}, {pipeline_mode = #tpu.pipeline_mode<synchronous>, transform_indices = @transform_3, window_bounds = array<i64: 128, 256>}, {pipeline_mode = #tpu.pipeline_mode<synchronous>, transform_indices = @transform_4, window_bounds = array<i64: 1, 256>}, {transform_indices = @transform_5, window_bounds = array<i64: 5, 256>}]} {
    %c0 = arith.constant 0 : index
    %c0_0 = arith.constant 0 : index
    %0 = vector.load %arg1[%c0, %c0_0] : memref<5x128xf32, #tpu.memory_space<vmem>>, vector<5x128xf32>
    %c0_1 = arith.constant 0 : index
    %c0_2 = arith.constant 0 : index
    %1 = vector.load %arg3[%c0_1, %c0_2] : memref<128x256xf32, #tpu.memory_space<vmem>>, vector<128x256xf32>
    %cst = arith.constant dense<0.000000e+00> : vector<5x256xf32>
    %2 = tpu.matmul %0, %1, %cst {dimension_numbers = #tpu.dot_dimension_numbers<[1], [0], [0], [1], [0, 0, 1, 1], [], []>} : vector<5x128xf32>, vector<128x256xf32>, vector<5x256xf32> -> vector<5x256xf32>
    %c0_3 = arith.constant 0 : index
    %c0_4 = arith.constant 0 : index
    %3 = vector.load %arg2[%c0_3, %c0_4] : memref<5x128xf32, #tpu.memory_space<vmem>>, vector<5x128xf32>
    %c0_5 = arith.constant 0 : index
    %c0_6 = arith.constant 0 : index
    %4 = vector.load %arg4[%c0_5, %c0_6] : memref<128x256xf32, #tpu.memory_space<vmem>>, vector<128x256xf32>
    %cst_7 = arith.constant dense<0.000000e+00> : vector<5x256xf32>
    %5 = tpu.matmul %3, %4, %cst_7 {dimension_numbers = #tpu.dot_dimension_numbers<[1], [0], [0], [1], [0, 0, 1, 1], [], []>} : vector<5x128xf32>, vector<128x256xf32>, vector<5x256xf32> -> vector<5x256xf32>
    %6 = arith.addf %2, %5 : vector<5x256xf32>
    %c0_8 = arith.constant 0 : index
    %c0_9 = arith.constant 0 : index
    %7 = vector.load %arg5[%c0_8, %c0_9] : memref<1x256xf32, #tpu.memory_space<vmem>>, vector<1x256xf32>
    %8 = vector.broadcast %7 : vector<1x256xf32> to vector<5x256xf32>
    %9 = arith.addf %6, %8 : vector<5x256xf32>
    %cst_10 = arith.constant 2.000000e-01 : f32
    %10 = vector.broadcast %cst_10 : f32 to vector<5x256xf32>
    %11 = arith.mulf %10, %9 : vector<5x256xf32>
    %12 = arith.maximumf %9, %11 : vector<5x256xf32>
    %c0_11 = arith.constant 0 : index
    %c0_12 = arith.constant 0 : index
    %13 = vector.load %arg6[%c0_11, %c0_12] : memref<5x256xf32, #tpu.memory_space<vmem>>, vector<5x256xf32>
    tpu.vector_store %arg6[%c0_11, %c0_12], %12 {strides = array<i32>} : memref<5x256xf32, #tpu.memory_space<vmem>>, vector<5x256xf32>,
    return
  }
  func.func @transform_0(%arg0: i32) -> (i32, i32) {
    %c0_i32 = arith.constant 0 : i32
    %c0_i32_0 = arith.constant 0 : i32
    return %arg0, %c0_i32 : i32, i32
  }
  func.func @transform_1(%arg0: i32) -> (i32, i32) {
    %c0_i32 = arith.constant 0 : i32
    %c0_i32_0 = arith.constant 0 : i32
    return %arg0, %c0_i32 : i32, i32
  }
  func.func @transform_2(%arg0: i32) -> (i32, i32) {
    %c0_i32 = arith.constant 0 : i32
    %c0_i32_0 = arith.constant 0 : i32
    %c0_i32_1 = arith.constant 0 : i32
    return %c0_i32, %c0_i32_0 : i32, i32
  }
  func.func @transform_3(%arg0: i32) -> (i32, i32) {
    %c0_i32 = arith.constant 0 : i32
    %c0_i32_0 = arith.constant 0 : i32
    %c0_i32_1 = arith.constant 0 : i32
    return %c0_i32, %c0_i32_0 : i32, i32
  }
  func.func @transform_4(%arg0: i32) -> (i32, i32) {
    %c0_i32 = arith.constant 0 : i32
    %c0_i32_0 = arith.constant 0 : i32
    %c0_i32_1 = arith.constant 0 : i32
    return %c0_i32, %c0_i32_0 : i32, i32
  }
  func.func @transform_5(%arg0: i32) -> (i32, i32) {
    %c0_i32 = arith.constant 0 : i32
    %c0_i32_0 = arith.constant 0 : i32
    return %arg0, %c0_i32 : i32, i32
  }
}

</mosaic_0001>

<bundles_post_ra>
// kernel: tile.8
= control target key start
LH: loop header
LB: loop body
LE: loop exit
PB: predicated region body
PF: predicated region fallthrough
CT: control target
= control target key end

     0   :  { %s22_s0 = inlined_call_operand.vmem [shape: f32[32], index: 0, kind: input, shape index: {}]   ;;  %s23_s1 = inlined_call_operand.vmem [shape: f32[8,32], index: 1, kind: output, shape index: {}]  }
   0x1   :  { %v4_v0 = vld [vmem:[%s22_s0] ss:$0 sm:$0xff] }
   0x2   :  { %5 = vst [vmem:[%s23_s1] sm:$0xff] %v4_v0 }

// kernel: tile.9
= control target key start
LH: loop header
LB: loop body
LE: loop exit
PB: predicated region body
PF: predicated region fallthrough
CT: control target
= control target key end

     0   :  { %s7_s6 = smov 3  ;;  %s14_s9 = smov 3  ;;  %vm4_vm0 = vcmask 261120   ;;  %vm11_vm1 = vcmask 1048320   ;;  %vm18_vm2 = vcmask 785920   ;;  %vm25_vm3 = vcmask 523520   ;;  %s76_s0 = inlined_call_operand.vmem [shape: f32[8,32], index: 0, kind: input, shape index: {}]   ;;  %s77_s1 = inlined_call_operand.vmem [shape: f32[1,256], index: 1, kind: output, shape index: {}]  }
   0x1   :  { %v38_v0 = vld [vmem:[%s76_s0 + $0x3] ss:$4 sm:%s7_s6]   ;;  %s45_s10 = smov 96   ;;  %s21_s11 = smov 3  ;;  %v39_v1 = vld [vmem:[%s76_s0 + $0x2] ss:$4 sm:%s14_s9]  }
   0x2   :  { %9 = vrot.lane.b32.xlu0 %v38_v0, %s45_s10  ;;  %v40_v2 = vld [vmem:[%s76_s0 + $0x1] ss:$4 sm:%s21_s11]   ;;  %s2_s16 = smov 3  ;;  %s46_s17 = smov 32  }
   0x3   :  { %23 = vrot.lane.b32.xlu1 %v40_v2, %s46_s17  ;;  %v3_v3 = vld [vmem:[%s76_s0] ss:$4 sm:%s2_s16]   ;;  %s47_s0 = smov 64  }
   0x4   :  { %5 = vst.msk [vmem:[#allocation0] ss:$8 sm:$0x3] %vm4_vm0, %v3_v3  }
   0x6   :  { %16 = vrot.lane.b32.xlu0 %v39_v1, %s47_s0 }
  0x74   :  { %v10_v4 = vpop.permute.xlu0 %9  }
  0x75   :  { %12 = vst.msk [vmem:[#allocation0] ss:$8 sm:$0x3] %vm11_vm1, %v10_v4   ;;  %v24_v5 = vpop.permute.xlu1 %23  }
  0x78   :  { %v17_v6 = vpop.permute.xlu0 %16  }
  0x79   :  { %19 = vst.msk [vmem:[#allocation0] ss:$8 sm:$0x3] %vm18_vm2, %v17_v6  }
  0x7a   :  { %26 = vst.msk [vmem:[#allocation0] ss:$8 sm:$0x3] %vm25_vm3, %v24_v5  }
  0x81   :  { %v30_v7 = vld [vmem:[#allocation0] sm:$0x1]  ;;  %v34_v8 = vld [vmem:[#allocation0 + $0x8] sm:$0x1] }
  0x82   :  { %32 = vst [vmem:[%s77_s1] sm:$0x1] %v30_v7  ;;  %41 = vst [vmem:[%s77_s1 + $0x1] sm:$0x1] %v34_v8 }

// kernel: fuse_embeddings.1
= control target key start
LH: loop header
LB: loop body
LE: loop exit
PB: predicated region body
PF: predicated region fallthrough
CT: control target
= control target key end

     0   :  { %v319_v3 = vmov 0.0   ;;  %s557_s3 = inlined_call_operand.vmem [shape: f32[128,256], index: 3, kind: input, shape index: {}]   ;;  %s558_s2 = inlined_call_operand.vmem [shape: f32[128,256], index: 2, kind: input, shape index: {}]   ;;  %s559_s1 = inlined_call_operand.vmem [shape: f32[5,128], index: 1, kind: input, shape index: {}]   ;;  %s560_s0 = inlined_call_operand.vmem [shape: f32[5,128], index: 0, kind: input, shape index: {}]   ;;  %s561_s4 = inlined_call_operand.vmem [shape: f32[1,256], index: 4, kind: input, shape index: {}]   ;;  %s562_s5 = inlined_call_operand.vmem [shape: f32[5,256], index: 5, kind: output, shape index: {}]  }
   0x1   :  { %v55_v0 = vld [vmem:[%s557_s3 + $0x8] sm:$0xff]  ;;  %v57_v1 = vld [vmem:[%s557_s3 + $0x18] sm:$0xff]  ;;  %150 = vmatprep.mubr.f32.mxu1 %v319_v3  ;;  %221 = vmatprep.mubr.f32.mxu0 %v319_v3  ;;  %v54_v6 = vld [vmem:[%s557_s3] sm:$0xff] }
   0x2   :  { %v22_v2 = vld [vmem:[%s558_s2 + $0x8] sm:$0xff]  ;;  %v252_v4 = vpack.c.bf16 %v57_v1, %v55_v0  ;;  %v24_v5 = vld [vmem:[%s558_s2 + $0x18] sm:$0xff]  ;;  %v56_v7 = vld [vmem:[%s557_s3 + $0x10] sm:$0xff] }
   0x3   :  { %v284_v8 = vpack.c.bf16 %v24_v5, %v22_v2  ;;  %v254_v9 = vpack.c.bf16 %v56_v7, %v54_v6  ;;  %v21_v10 = vld [vmem:[%s558_s2] sm:$0xff]  ;;  %v23_v11 = vld [vmem:[%s558_s2 + $0x10] sm:$0xff]  ;;  %v59_v12 = vld [vmem:[%s557_s3 + $0x28] sm:$0xff] }
   0x4   :  { %253 = vmatprep.subr.bf16.mxu1 %v252_v4  ;;  %v286_v13 = vpack.c.bf16 %v23_v11, %v21_v10  ;;  %v61_v14 = vld [vmem:[%s557_s3 + $0x38] sm:$0xff]  ;;  %v26_v15 = vld [vmem:[%s558_s2 + $0x28] sm:$0xff]  ;;  %v58_v19 = vld [vmem:[%s557_s3 + $0x20] sm:$0xff] }
   0x5   :  { %v28_v16 = vld [vmem:[%s558_s2 + $0x38] sm:$0xff]  ;;  %285 = vmatprep.subr.bf16.mxu0 %v284_v8  ;;  %255 = vmatpush1.bf16.msra.mxu1 %v254_v9  ;;  %v256_v17 = vpack.c.bf16 %v61_v14, %v59_v12  ;;  %v60_v20 = vld [vmem:[%s557_s3 + $0x30] sm:$0xff]  ;;  %v25_v21 = vld [vmem:[%s558_s2 + $0x20] sm:$0xff] }
   0x6   :  { %v288_v18 = vpack.c.bf16 %v28_v16, %v26_v15  ;;  %287 = vmatpush1.bf16.msra.mxu0 %v286_v13  ;;  %v258_v22 = vpack.c.bf16 %v60_v20, %v58_v19  ;;  %v27_v23 = vld [vmem:[%s558_s2 + $0x30] sm:$0xff]  ;;  %v63_v24 = vld [vmem:[%s557_s3 + $0x48] sm:$0xff]  ;;  %v65_v25 = vld [vmem:[%s557_s3 + $0x58] sm:$0xff] }
   0x7   :  { %257 = vmatprep.subr.bf16.mxu1 %v256_v17  ;;  %v290_v26 = vpack.c.bf16 %v27_v23, %v25_v21  ;;  %v260_v27 = vpack.c.bf16 %v65_v25, %v63_v24  ;;  %v30_v28 = vld [vmem:[%s558_s2 + $0x48] sm:$0xff]  ;;  %v32_v29 = vld [vmem:[%s558_s2 + $0x58] sm:$0xff]  ;;  %v62_v30 = vld [vmem:[%s557_s3 + $0x40] sm:$0xff] }
   0x8   :  { %289 = vmatprep.subr.bf16.mxu0 %v288_v18  ;;  %v292_v31 = vpack.c.bf16 %v32_v29, %v30_v28  ;;  %v64_v32 = vld [vmem:[%s557_s3 + $0x50] sm:$0xff]  ;;  %v29_v33 = vld [vmem:[%s558_s2 + $0x40] sm:$0xff]  ;;  %v67_v36 = vld [vmem:[%s557_s3 + $0x68] sm:$0xff] }
   0x9   :  { %v31_v34 = vld [vmem:[%s558_s2 + $0x50] sm:$0xff]  ;;  %259 = vmatpush1.bf16.msra.mxu1 %v258_v22  ;;  %v262_v35 = vpack.c.bf16 %v64_v32, %v62_v30  ;;  %v69_v37 = vld [vmem:[%s557_s3 + $0x78] sm:$0xff]  ;;  %v34_v38 = vld [vmem:[%s558_s2 + $0x68] sm:$0xff] }
   0xa   :  { %291 = vmatpush1.bf16.msra.mxu0 %v290_v26  ;;  %261 = vmatprep.subr.bf16.mxu1 %v260_v27  ;;  %v294_v39 = vpack.c.bf16 %v31_v34, %v29_v33  ;;  %v264_v40 = vpack.c.bf16 %v69_v37, %v67_v36  ;;  %v36_v41 = vld [vmem:[%s558_s2 + $0x78] sm:$0xff]  ;;  %v66_v42 = vld [vmem:[%s557_s3 + $0x60] sm:$0xff]  ;;  %v68_v43 = vld [vmem:[%s557_s3 + $0x70] sm:$0xff] }
   0xb   :  { %293 = vmatprep.subr.bf16.mxu0 %v292_v31  ;;  %v296_v44 = vpack.c.bf16 %v36_v41, %v34_v38  ;;  %v33_v45 = vld [vmem:[%s558_s2 + $0x60] sm:$0xff]  ;;  %v35_v46 = vld [vmem:[%s558_s2 + $0x70] sm:$0xff]  ;;  %v71_v47 = vld [vmem:[%s557_s3 + $0x88] sm:$0xff]  ;;  %v266_v51 = vpack.c.bf16 %v68_v43, %v66_v42 }
   0xc   :  { %v73_v48 = vld [vmem:[%s557_s3 + $0x98] sm:$0xff]  ;;  %v38_v49 = vld [vmem:[%s558_s2 + $0x88] sm:$0xff]  ;;  %v298_v52 = vpack.c.bf16 %v35_v46, %v33_v45  ;;  %v70_v54 = vld [vmem:[%s557_s3 + $0x80] sm:$0xff] }
   0xd   :  { %v40_v50 = vld [vmem:[%s558_s2 + $0x98] sm:$0xff]  ;;  %263 = vmatpush1.bf16.msra.mxu1 %v262_v35  ;;  %v268_v53 = vpack.c.bf16 %v73_v48, %v71_v47  ;;  %v72_v55 = vld [vmem:[%s557_s3 + $0x90] sm:$0xff]  ;;  %v37_v56 = vld [vmem:[%s558_s2 + $0x80] sm:$0xff]  ;;  %v230_v35 = vlaneseq }
   0xe   :  { %295 = vmatpush1.bf16.msra.mxu0 %v294_v39  ;;  %265 = vmatprep.subr.bf16.mxu1 %v264_v40  ;;  %v300_v57 = vpack.c.bf16 %v40_v50, %v38_v49  ;;  %v39_v58 = vld [vmem:[%s558_s2 + $0x90] sm:$0xff]  ;;  %v75_v59 = vld [vmem:[%s557_s3 + $0xa8] sm:$0xff]  ;;  %v77_v60 = vld [vmem:[%s557_s3 + $0xb8] sm:$0xff]  ;;  %v270_v63 = vpack.c.bf16 %v72_v55, %v70_v54 }
   0xf   :  { %297 = vmatprep.subr.bf16.mxu0 %v296_v44  ;;  %v42_v61 = vld [vmem:[%s558_s2 + $0xa8] sm:$0xff]  ;;  %v44_v62 = vld [vmem:[%s558_s2 + $0xb8] sm:$0xff]  ;;  %v302_v0 = vpack.c.bf16 %v39_v58, %v37_v56  ;;  %v272_v1 = vpack.c.bf16 %v77_v60, %v75_v59  ;;  %v74_v2 = vld [vmem:[%s557_s3 + $0xa0] sm:$0xff]  ;;  %v231_v36 = vshrl.u32 %v230_v35, 7 }
  0x10   :  { %v76_v3 = vld [vmem:[%s557_s3 + $0xb0] sm:$0xff]  ;;  %v41_v4 = vld [vmem:[%s558_s2 + $0xa0] sm:$0xff]  ;;  %v304_v5 = vpack.c.bf16 %v44_v62, %v42_v61  ;;  %v79_v7 = vld [vmem:[%s557_s3 + $0xc8] sm:$0xff] }
  0x11   :  { %267 = vmatpush1.bf16.msra.mxu1 %v266_v51  ;;  %v43_v6 = vld [vmem:[%s558_s2 + $0xb0] sm:$0xff]  ;;  %v81_v8 = vld [vmem:[%s557_s3 + $0xd8] sm:$0xff]  ;;  %v46_v9 = vld [vmem:[%s558_s2 + $0xc8] sm:$0xff]  ;;  %v274_v11 = vpack.c.bf16 %v76_v3, %v74_v2  ;;  %v232_v37 = vsub.s32 0, %v231_v36  ;;  %v236_v39 = vsub.s32 1, %v231_v36 }
  0x12   :  { %299 = vmatpush1.bf16.msra.mxu0 %v298_v52  ;;  %269 = vmatprep.subr.bf16.mxu1 %v268_v53  ;;  %v48_v10 = vld [vmem:[%s558_s2 + $0xd8] sm:$0xff]  ;;  %v306_v12 = vpack.c.bf16 %v43_v6, %v41_v4  ;;  %v276_v13 = vpack.c.bf16 %v81_v8, %v79_v7  ;;  %v78_v14 = vld [vmem:[%s557_s3 + $0xc0] sm:$0xff]  ;;  %v80_v15 = vld [vmem:[%s557_s3 + $0xd0] sm:$0xff] }
  0x13   :  { %301 = vmatprep.subr.bf16.mxu0 %v300_v57  ;;  %v45_v16 = vld [vmem:[%s558_s2 + $0xc0] sm:$0xff]  ;;  %v308_v17 = vpack.c.bf16 %v48_v10, %v46_v9  ;;  %v47_v18 = vld [vmem:[%s558_s2 + $0xd0] sm:$0xff]  ;;  %v83_v19 = vld [vmem:[%s557_s3 + $0xe8] sm:$0xff]  ;;  %v278_v23 = vpack.c.bf16 %v80_v15, %v78_v14 }
  0x14   :  { %v85_v20 = vld [vmem:[%s557_s3 + $0xf8] sm:$0xff]  ;;  %v50_v21 = vld [vmem:[%s558_s2 + $0xe8] sm:$0xff]  ;;  %v310_v24 = vpack.c.bf16 %v47_v18, %v45_v16  ;;  %v82_v26 = vld [vmem:[%s557_s3 + $0xe0] sm:$0xff] }
  0x15   :  { %271 = vmatpush1.bf16.msra.mxu1 %v270_v63  ;;  %v52_v22 = vld [vmem:[%s558_s2 + $0xf8] sm:$0xff]  ;;  %v280_v25 = vpack.c.bf16 %v85_v20, %v83_v19  ;;  %v84_v27 = vld [vmem:[%s557_s3 + $0xf0] sm:$0xff]  ;;  %v49_v29 = vld [vmem:[%s558_s2 + $0xe0] sm:$0xff] }
  0x16   :  { %303 = vmatpush1.bf16.msra.mxu0 %v302_v0  ;;  %273 = vmatprep.subr.bf16.mxu1 %v272_v1  ;;  %v312_v28 = vpack.c.bf16 %v52_v22, %v50_v21  ;;  %v51_v30 = vld [vmem:[%s558_s2 + $0xf0] sm:$0xff]  ;;  %v282_v31 = vpack.c.bf16 %v84_v27, %v82_v26  ;;  %v53_v33 = vld [vmem:[%s559_s1] sm:$0x1f] }
  0x17   :  { %305 = vmatprep.subr.bf16.mxu0 %v304_v5  ;;  %v314_v32 = vpack.c.bf16 %v51_v30, %v49_v29  ;;  %v20_v34 = vld [vmem:[%s560_s0] sm:$0x1f] }
  0x18   :  { %v228_v38 = vld [vmem:[%s561_s4] sm:$0x3] }
  0x19   :  { %275 = vmatpush1.bf16.msra.mxu1 %v274_v11  ;;  %v233_v41 = vrot.slane %v228_v38, %v232_v37  ;;  %v237_v44 = vrot.slane %v228_v38, %v236_v39 }
  0x1a   :  { %307 = vmatpush1.bf16.msra.mxu0 %v306_v12  ;;  %277 = vmatprep.subr.bf16.mxu1 %v276_v13 }
  0x1b   :  { %309 = vmatprep.subr.bf16.mxu0 %v308_v17 }
  0x1d   :  { %279 = vmatpush1.bf16.msra.mxu1 %v278_v23 }
  0x1e   :  { %311 = vmatpush1.bf16.msra.mxu0 %v310_v24  ;;  %281 = vmatprep.subr.bf16.mxu1 %v280_v25 }
  0x1f   :  { %313 = vmatprep.subr.bf16.mxu0 %v312_v28 }
  0x21   :  { %283 = vmatpush1.bf16.msra.mxu1 %v282_v31 }
  0x22   :  { %315 = vmatpush1.bf16.msra.mxu0 %v314_v32 }
  0x24   :  { %151 = vmatmul.mubr.f32.vlgmr.msra.gmra.mrb[0].mxu1 %v53_v33 }
  0x25   :  { %222 = vmatmul.mubr.f32.vlgmr.msra.gmra.mrb[0].mxu0 %v20_v34 }
  0xf7   :  { %v152_v40 = vpop.f32.mrb[0].mxu1 }
  0xf8   :  { %v223_v42 = vpop.f32.mrb[0].mxu0  ;;  %v154_v43 = vpop.f32.mrb[1].mxu1 }
  0xf9   :  { %v224_v45 = vadd.f32 %v223_v42, %v152_v40  ;;  %v225_v46 = vpop.f32.mrb[1].mxu0 }
  0xfa   :  { %v226_v47 = vadd.f32 %v225_v46, %v154_v43 }
  0xfb   :  { %v240_v48 = vadd.f32 %v233_v41, %v224_v45 }
  0xfc   :  { %v241_v49 = vadd.f32 %v237_v44, %v226_v47 }
  0xfd   :  { %v242_v50 = vmul.f32 0.2, %v240_v48 }
  0xfe   :  { %v243_v51 = vmul.f32 0.2, %v241_v49 }
  0xff   :  { %v244_v52 = vmax.f32 %v240_v48, %v242_v50 }
 0x100   :  { %v245_v53 = vmax.f32 %v241_v49, %v243_v51 }
 0x101   :  { %246 = vst [vmem:[%s562_s5] sm:$0x1f] %v244_v52 }
 0x102   :  { %247 = vst [vmem:[%s562_s5 + $0x8] sm:$0x1f] %v245_v53 }

</bundles_post_ra>
